<compile_context>
chip_gen: v5e
topology: v5e:2x2
jax: 0.10.0
libtpu: 0.0.40
codegen_flags: <defaults>
</compile_context>

<pallas_src>
import jax
import jax.numpy as jnp
from jax.experimental import pallas as pl
from jax.experimental.pallas import tpu as pltpu

LANES = 128
MAX_TILE_ROWS = 512          # 512*128*4B = 256 KiB per tile; 2 inputs * 2 bufs = 1 MiB


def _loss_kernel(scale_ref, e_ref, fr_ref, fp_ref, out_ref, acc_ref):
    """scale_ref: SMEM (2,) = [energy_weight/n_graphs, forces_weight/(3*n_atoms)]
       e_ref:     VMEM (8,128) resident (rows 0:E_ref, 1:E_pred, 2:mask/num_atoms)
       fr/fp_ref: VMEM (TILE_ROWS,128) force tiles (lane-dense, zero-padded)
       out_ref:   SMEM (1,) scalar loss
       acc_ref:   VMEM (1,128) running per-lane partial sum of dF^2
    """
    pid = pl.program_id(0)

    @pl.when(pid == 0)
    def _init():
        acc_ref[...] = jnp.zeros_like(acc_ref)

    # --- forces: accumulate per-lane partial sums of squared differences ---
    df = fr_ref[...] - fp_ref[...]
    acc_ref[...] += jnp.sum(df * df, axis=0, keepdims=True)

    @pl.when(pid == pl.num_programs(0) - 1)
    def _finalize():
        # --- energy term: sum_g (dE^2 * mask/num_atoms)  (padded lanes are 0) ---
        de = e_ref[0:1, :] - e_ref[1:2, :]
        e_sum = jnp.sum(de * de * e_ref[2:3, :])
        f_sum = jnp.sum(acc_ref[...])
        out_ref[0] = scale_ref[0] * e_sum + scale_ref[1] * f_sum


def weighted_energy_forces_loss(ref_energy, pred_energy, ptr,
                                ref_forces, pred_forces,
                                energy_weight=1.0, forces_weight=1.0):
    """ref_energy/pred_energy: (n_graphs,), ptr: (n_graphs+1,) int,
    ref_forces/pred_forces: (n_atoms, 3). Returns scalar f32 loss."""
    n_graphs = ref_energy.shape[0]
    n_atoms = ref_forces.shape[0]
    assert n_graphs <= LANES, "kernel assumes n_graphs <= 128 (single energy row)"
    n_force_elems = n_atoms * 3

    # --- lane-dense force packing: (n_atoms,3) -> flat -> (total_rows, 128) ---
    rows = max(1, -(-n_force_elems // LANES))
    rows_padded = ((rows + 7) // 8) * 8
    tile_rows = min(MAX_TILE_ROWS, rows_padded)
    num_tiles = -(-rows_padded // tile_rows)
    total_rows = num_tiles * tile_rows
    total_elems = total_rows * LANES

    def pack_forces(f):
        flat = f.astype(jnp.float32).reshape(-1)
        flat = jnp.pad(flat, (0, total_elems - n_force_elems))
        return flat.reshape(total_rows, LANES)

    fr = pack_forces(ref_forces)
    fp = pack_forces(pred_forces)

    # --- energy-side packing: one (8,128) block, rows = E_ref, E_pred, mask/num_atoms ---
    num_atoms_g = (ptr[1:] - ptr[:-1]).astype(jnp.float32)
    inv_w = jnp.ones((n_graphs,), jnp.float32) / num_atoms_g   # same hazard as torch ref
    e_pack = jnp.zeros((8, LANES), jnp.float32)
    e_pack = e_pack.at[0, :n_graphs].set(ref_energy.astype(jnp.float32))
    e_pack = e_pack.at[1, :n_graphs].set(pred_energy.astype(jnp.float32))
    e_pack = e_pack.at[2, :n_graphs].set(inv_w)

    # --- fold weights and mean divisors into two SMEM scalars (no recompile on change) ---
    scale = jnp.array(
        [jnp.float32(energy_weight) / jnp.float32(n_graphs),
         jnp.float32(forces_weight) / jnp.float32(n_force_elems)],
        dtype=jnp.float32)

    out = pl.pallas_call(
        _loss_kernel,
        out_shape=jax.ShapeDtypeStruct((1,), jnp.float32),
        grid=(num_tiles,),
        in_specs=[
            pl.BlockSpec(memory_space=pltpu.MemorySpace.SMEM),        # scale (2,)
            pl.BlockSpec((8, LANES), lambda i: (0, 0)),               # e_pack, resident
            pl.BlockSpec((tile_rows, LANES), lambda i: (i, 0)),       # fr tiles
            pl.BlockSpec((tile_rows, LANES), lambda i: (i, 0)),       # fp tiles
        ],
        out_specs=pl.BlockSpec(memory_space=pltpu.MemorySpace.SMEM),  # (1,) scalar
        scratch_shapes=[pltpu.VMEM((1, LANES), jnp.float32)],
        compiler_params=pltpu.CompilerParams(
            dimension_semantics=("arbitrary",)),                      # reduction axis
    )(scale, e_pack, fr, fp)
    return out[0]


def _reference_loss(ref_energy, pred_energy, ptr, ref_forces, pred_forces,
                    energy_weight=1.0, forces_weight=1.0):
    num_atoms = (ptr[1:] - ptr[:-1]).astype(jnp.float32)
    e_term = jnp.mean(jnp.square(ref_energy - pred_energy) / num_atoms)
    f_term = jnp.mean(jnp.square(ref_forces - pred_forces))
    return energy_weight * e_term + forces_weight * f_term


if __name__ == "__main__":
    key = jax.random.PRNGKey(0)
    k1, k2, k3, k4 = jax.random.split(key, 4)

    # 2 graphs: graph 0 has 5 atoms, graph 1 has 3 atoms -> 8 atoms total
    ptr = jnp.array([0, 5, 8], dtype=jnp.int32)
    n_graphs = 2
    n_atoms = 8

    ref_energy = jax.random.normal(k1, (n_graphs,), dtype=jnp.float32)
    pred_energy = jax.random.normal(k2, (n_graphs,), dtype=jnp.float32)
    ref_forces = jax.random.normal(k3, (n_atoms, 3), dtype=jnp.float32)
    pred_forces = jax.random.normal(k4, (n_atoms, 3), dtype=jnp.float32)

    # Deterministic "buffer" parameters from the module __init__ (scalars).
    energy_weight = 1.0
    forces_weight = 1.0

    loss = weighted_energy_forces_loss(
        ref_energy, pred_energy, ptr, ref_forces, pred_forces,
        energy_weight=energy_weight, forces_weight=forces_weight)
    loss = jax.block_until_ready(loss)

    expected = _reference_loss(
        ref_energy, pred_energy, ptr, ref_forces, pred_forces,
        energy_weight=energy_weight, forces_weight=forces_weight)

    assert jnp.allclose(loss, expected, rtol=1e-5, atol=1e-6), (loss, expected)
    print("KERNEL_OK")
</pallas_src>

<mosaic_0001>
module attributes {stable_mosaic.version = 11 : i64} {
  func.func @_loss_kernel(%arg0: i32, %arg1: memref<2xf32, #tpu.memory_space<smem>>, %arg2: memref<8x128xf32, #tpu.memory_space<vmem>>, %arg3: memref<8x128xf32, #tpu.memory_space<vmem>>, %arg4: memref<8x128xf32, #tpu.memory_space<vmem>>, %arg5: memref<1xf32, #tpu.memory_space<smem>>, %arg6: memref<1x128xf32, #tpu.memory_space<vmem>>) attributes {dimension_semantics = [#tpu.dimension_semantics<arbitrary>], iteration_bounds = array<i64: 1>, scalar_prefetch = 0 : i64, scratch_operands = 1 : i64, tpu.core_type = #tpu.core_type<tc>, window_params = [{transform_indices = @transform_0, window_bounds = array<i64: 2>}, {pipeline_mode = #tpu.pipeline_mode<synchronous>, transform_indices = @transform_1, window_bounds = array<i64: 8, 128>}, {transform_indices = @transform_2, window_bounds = array<i64: 8, 128>}, {transform_indices = @transform_3, window_bounds = array<i64: 8, 128>}, {transform_indices = @transform_4, window_bounds = array<i64: 1>}]} {
    %c0_i32 = arith.constant 0 : i32
    %0 = arith.cmpi eq, %arg0, %c0_i32 : i32
    %1 = arith.extui %0 : i1 to i32
    %c0_i32_0 = arith.constant 0 : i32
    %2 = arith.cmpi ne, %1, %c0_i32_0 : i32
    scf.if %2 {
      %cst_10 = arith.constant 0.000000e+00 : f32
      %15 = vector.broadcast %cst_10 : f32 to vector<1x128xf32>
      %c0_11 = arith.constant 0 : index
      %c0_12 = arith.constant 0 : index
      %16 = vector.load %arg6[%c0_11, %c0_12] : memref<1x128xf32, #tpu.memory_space<vmem>>, vector<1x128xf32>
      tpu.vector_store %arg6[%c0_11, %c0_12], %15 {strides = array<i32>} : memref<1x128xf32, #tpu.memory_space<vmem>>, vector<1x128xf32>,
    } else {
    }
    %c0 = arith.constant 0 : index
    %c0_1 = arith.constant 0 : index
    %3 = vector.load %arg3[%c0, %c0_1] : memref<8x128xf32, #tpu.memory_space<vmem>>, vector<8x128xf32>
    %c0_2 = arith.constant 0 : index
    %c0_3 = arith.constant 0 : index
    %4 = vector.load %arg4[%c0_2, %c0_3] : memref<8x128xf32, #tpu.memory_space<vmem>>, vector<8x128xf32>
    %5 = arith.subf %3, %4 : vector<8x128xf32>
    %c0_4 = arith.constant 0 : index
    %c0_5 = arith.constant 0 : index
    %6 = vector.load %arg6[%c0_4, %c0_5] : memref<1x128xf32, #tpu.memory_space<vmem>>, vector<1x128xf32>
    %7 = arith.mulf %5, %5 : vector<8x128xf32>
    %cst = arith.constant dense<0.000000e+00> : vector<128xf32>
    %8 = vector.multi_reduction <add>, %7, %cst [0] : vector<8x128xf32> to vector<128xf32>
    %9 = vector.shape_cast %8 : vector<128xf32> to vector<1x128xf32>
    %10 = arith.addf %6, %9 : vector<1x128xf32>
    %c0_6 = arith.constant 0 : index
    %c0_7 = arith.constant 0 : index
    %11 = vector.load %arg6[%c0_6, %c0_7] : memref<1x128xf32, #tpu.memory_space<vmem>>, vector<1x128xf32>
    tpu.vector_store %arg6[%c0_6, %c0_7], %10 {strides = array<i32>} : memref<1x128xf32, #tpu.memory_space<vmem>>, vector<1x128xf32>,
    %c0_i32_8 = arith.constant 0 : i32
    %12 = arith.cmpi eq, %arg0, %c0_i32_8 : i32
    %13 = arith.extui %12 : i1 to i32
    %c0_i32_9 = arith.constant 0 : i32
    %14 = arith.cmpi ne, %13, %c0_i32_9 : i32
    scf.if %14 {
      %c0_10 = arith.constant 0 : index
      %c0_11 = arith.constant 0 : index
      %15 = vector.load %arg2[%c0_10, %c0_11] : memref<8x128xf32, #tpu.memory_space<vmem>>, vector<1x128xf32>
      %c1 = arith.constant 1 : index
      %c0_12 = arith.constant 0 : index
      %16 = vector.load %arg2[%c1, %c0_12] : memref<8x128xf32, #tpu.memory_space<vmem>>, vector<1x128xf32>
      %17 = arith.subf %15, %16 : vector<1x128xf32>
      %18 = arith.mulf %17, %17 : vector<1x128xf32>
      %c2 = arith.constant 2 : index
      %c0_13 = arith.constant 0 : index
      %19 = vector.load %arg2[%c2, %c0_13] : memref<8x128xf32, #tpu.memory_space<vmem>>, vector<1x128xf32>
      %20 = arith.mulf %18, %19 : vector<1x128xf32>
      %21 = vector.shape_cast %20 : vector<1x128xf32> to vector<1x1x128xf32>
      %cst_14 = arith.constant dense<0.000000e+00> : vector<1xf32>
      %22 = vector.multi_reduction <add>, %21, %cst_14 [1, 2] : vector<1x1x128xf32> to vector<1xf32>
      %23 = vector.shape_cast %22 : vector<1xf32> to vector<1x1x1xf32>
      %24 = vector.extract %23[0, 0, 0] : f32 from vector<1x1x1xf32>
      %c0_15 = arith.constant 0 : index
      %c0_16 = arith.constant 0 : index
      %25 = vector.load %arg6[%c0_15, %c0_16] : memref<1x128xf32, #tpu.memory_space<vmem>>, vector<1x128xf32>
      %26 = vector.shape_cast %25 : vector<1x128xf32> to vector<1x1x128xf32>
      %cst_17 = arith.constant dense<0.000000e+00> : vector<1xf32>
      %27 = vector.multi_reduction <add>, %26, %cst_17 [1, 2] : vector<1x1x128xf32> to vector<1xf32>
      %28 = vector.shape_cast %27 : vector<1xf32> to vector<1x1x1xf32>
      %29 = vector.extract %28[0, 0, 0] : f32 from vector<1x1x1xf32>
      %c0_18 = arith.constant 0 : index
      %30 = memref.load %arg1[%c0_18] : memref<2xf32, #tpu.memory_space<smem>>
      %31 = arith.mulf %30, %24 : f32
      %c1_19 = arith.constant 1 : index
      %32 = memref.load %arg1[%c1_19] : memref<2xf32, #tpu.memory_space<smem>>
      %33 = arith.mulf %32, %29 : f32
      %34 = arith.addf %31, %33 : f32
      %c0_20 = arith.constant 0 : index
      %35 = memref.load %arg5[%c0_20] : memref<1xf32, #tpu.memory_space<smem>>
      memref.store %34, %arg5[%c0_20] : memref<1xf32, #tpu.memory_space<smem>>
    } else {
    }
    return
  }
  func.func @transform_0(%arg0: i32) -> i32 {
    %c0_i32 = arith.constant 0 : i32
    %c0_i32_0 = arith.constant 0 : i32
    return %c0_i32 : i32
  }
  func.func @transform_1(%arg0: i32) -> (i32, i32) {
    %c0_i32 = arith.constant 0 : i32
    %c0_i32_0 = arith.constant 0 : i32
    %c0_i32_1 = arith.constant 0 : i32
    return %c0_i32, %c0_i32_0 : i32, i32
  }
  func.func @transform_2(%arg0: i32) -> (i32, i32) {
    %c0_i32 = arith.constant 0 : i32
    %c0_i32_0 = arith.constant 0 : i32
    return %arg0, %c0_i32 : i32, i32
  }
  func.func @transform_3(%arg0: i32) -> (i32, i32) {
    %c0_i32 = arith.constant 0 : i32
    %c0_i32_0 = arith.constant 0 : i32
    return %arg0, %c0_i32 : i32, i32
  }
  func.func @transform_4(%arg0: i32) -> i32 {
    %c0_i32 = arith.constant 0 : i32
    %c0_i32_0 = arith.constant 0 : i32
    return %c0_i32 : i32
  }
}

</mosaic_0001>

<bundles_post_ra>
// kernel: tpu_custom_call.1
= control target key start
LH: loop header
LB: loop body
LE: loop exit
PB: predicated region body
PF: predicated region fallthrough
CT: control target
= control target key end

     0   :  { %9 = vsyncpa [#allocation5], 0  ;;  %s307_s0 = inlined_call_operand.hbm [shape: f32[2], index: 0, kind: input, shape index: {}]   ;;  %s308_s1 = inlined_call_operand.hbm [shape: f32[8,128], index: 1, kind: input, shape index: {}]   ;;  %s309_s2 = inlined_call_operand.hbm [shape: f32[8,128], index: 2, kind: input, shape index: {}]   ;;  %s310_s3 = inlined_call_operand.hbm [shape: f32[8,128], index: 3, kind: input, shape index: {}]   ;;  %s311_s4 = inlined_call_operand.hbm [shape: f32[1], index: 4, kind: output, shape index: {}]  }
   0x1   :  { %10 = vsyncpa [#allocation4], 0 }
   0x2   :  { %11 = vsyncpa [#allocation9], 0  ;;  %s38_s17 = sshll.u32 %s309_s2, 4  ;;  %s39_s17 = int_to_ptr.hbm [resolvable:$true] %s38_s17 }
   0x3   :  { %12 = vsyncpa [#allocation6], 0  ;;  %s261_s18 = smov [#allocation8]   ;;  %s18_s22 = sshll.u32 %s307_s0, 4  ;;  %s19_s22 = int_to_ptr.hbm [resolvable:$true] %s18_s22 }
   0x4   :  { %s40_s19 = sshll.u32 %s261_s18, 4  ;;  %s262_s23 = smov [#allocation3]   ;;  %s41_s19 = int_to_ptr.vmem [resolvable:$true] %s40_s19 }
   0x5   :  { %43 = dma.hbm_to_vmem [thread:$0]  %s39_s17, 128, %s41_s19, [#allocation9]  }
   0x6   :  { %21 = dma.hbm_to_smem %s19_s22, 16, %s262_s23, [#allocation5]  }
   0x7   :  { %s27_s26 = sshll.u32 %s308_s1, 4  ;;  %s263_s27 = smov [#allocation7]   ;;  %s28_s26 = int_to_ptr.hbm [resolvable:$true] %s27_s26 }
   0x8   :  { %s29_s2 = sshll.u32 %s263_s27, 4  ;;  %s49_s30 = sshll.u32 %s310_s3, 4  ;;  %s30_s2 = int_to_ptr.vmem [resolvable:$true] %s29_s2  ;;  %s50_s30 = int_to_ptr.hbm [resolvable:$true] %s49_s30 }
   0x9   :  { %32 = dma.hbm_to_vmem [thread:$0]  %s28_s26, 128, %s30_s2, [#allocation4]  }
   0xa   :  { %s264_s5 = smov [#allocation10]  }
   0xb   :  { %s51_s0 = sshll.u32 %s264_s5, 4  ;;  %s52_s0 = int_to_ptr.vmem [resolvable:$true] %s51_s0 }
   0xc   :  { %54 = dma.hbm_to_vmem [thread:$0]  %s50_s30, 128, %s52_s0, [#allocation9]  }
   0xd   :  { %253 = dma.done.wait [#allocation5], 16  }
   0xe   :  { %254 = vsyncadd [#allocation5], 4294967280 }
   0xf   :  { %255 = dma.done.wait [#allocation4], 128  }
  0x10   :  { %256 = vsyncadd [#allocation4], 4294967168 }
  0x11   :  { %257 = dma.done.wait [#allocation9], 256  }
  0x12   :  { %258 = vsyncadd [#allocation9], 4294967040 }
  0x13   :  { %71 = sfence }
  0x14   :  { %v93_v0 = vld [vmem:[#allocation7] sm:$0x1]  ;;  %v94_v1 = vld [vmem:[#allocation7 + $0x1] sm:$0x1]  ;;  %v77_v3 = vld [vmem:[#allocation8] sm:$0xff]  ;;  %v265_v6 = vmov 0.0  }
  0x15   :  { %v95_v2 = vsub.f32 %v93_v0, %v94_v1  ;;  %v78_v4 = vld [vmem:[#allocation10] sm:$0xff]  ;;  %v97_v5 = vld [vmem:[#allocation7 + $0x2] sm:$0x1]  ;;  %76 = vst [vmem:[#allocation2] sm:$0x1] %v265_v6  ;;  %vm99_vm0 = vcmask 1040384  }
  0x16   :  { %v79_v7 = vsub.f32 %v77_v3, %v78_v4  ;;  %s121_s1 = sld [smem:[#allocation3]]  ;;  %s133_s9 = sshll.u32 %s311_s4, 4  ;;  %s134_s9 = int_to_ptr.hbm [resolvable:$true] %s133_s9 }
  0x17   :  { %v96_v8 = vmul.f32 %v95_v2, %v95_v2  ;;  %s146_s3 = sld [smem:[#allocation3 + $0x1]]  ;;  %s266_s14 = smov [#allocation11]  }
  0x18   :  { %v81_v9 = vmul.f32 %v79_v7, %v79_v7 }
  0x19   :  { %v98_v10 = vmul.f32 %v97_v5, %v96_v8 }
  0x1a   :  { %v82_v11 = vrot.slane %v81_v9, 4 }
  0x1b   :  { %v100_v12 = vsel %vm99_vm0, %v98_v10, 0.0 }
  0x1c   :  { %101 = vadd.xlane.f32.xlu0 %v100_v12  ;;  %v83_v13 = vadd.f32 %v82_v11, %v81_v9  ;;  %v80_v17 = vld [vmem:[#allocation2] sm:$0x1] }
  0x1e   :  { %v84_v14 = vrot.slane %v83_v13, 2 }
  0x20   :  { %v85_v15 = vadd.f32 %v84_v14, %v83_v13 }
  0x22   :  { %v86_v16 = vrot.slane %v85_v15, 1 }
  0x24   :  { %v87_v18 = vadd.f32 %v86_v16, %v85_v15 }
  0x26   :  { %v88_v19 = vadd.f32 %v87_v18, %v80_v17 }
  0x28   :  { %89 = vst [vmem:[#allocation2] sm:$0x1] %v88_v19 }
  0x2f   :  { %v110_v20 = vld [vmem:[#allocation2] sm:$0x1] }
  0x30   :  { %v111_v21 = vsel %vm99_vm0, %v110_v20, 0.0 }
  0x31   :  { %112 = vadd.xlane.f32.xlu0 %v111_v21 }
  0x8f   :  { %v102_v22 = vpop.xlane.xlu0 %101 }
  0x90   :  { %v103_v23 = vrot.slane %v102_v22, 4 }
  0x92   :  { %v104_v24 = vadd.f32 %v103_v23, %v102_v22 }
  0x94   :  { %v105_v25 = vrot.slane %v104_v24, 2 }
  0x96   :  { %v106_v26 = vadd.f32 %v105_v25, %v104_v24 }
  0x98   :  { %v107_v27 = vrot.slane %v106_v26, 1 }
  0x9a   :  { %v108_v28 = vadd.f32 %v107_v27, %v106_v26 }
  0x9c   :  { %147 = vpush %v108_v28 }
  0xa4   :  { %v113_v29 = vpop.xlane.xlu0 %112 }
  0xa5   :  { %v114_v30 = vrot.slane %v113_v29, 4 }
  0xa7   :  { %v115_v31 = vadd.f32 %v114_v30, %v113_v29 }
  0xa9   :  { %v116_v32 = vrot.slane %v115_v31, 2 }
  0xab   :  { %v117_v33 = vadd.f32 %v116_v32, %v115_v31 }
  0xad   :  { %v118_v34 = vrot.slane %v117_v33, 1 }
  0xaf   :  { %v119_v35 = vadd.f32 %v118_v34, %v117_v33 }
  0xb1   :  { %149 = vpush %v119_v35 }
  0xcd   :  { %s148_s6 = spop %147 }
  0xce   :  { %s122_s10 = smul.f32 %s148_s6, %s121_s1 }
  0xe2   :  { %s150_s11 = spop %149 }
  0xe3   :  { %s124_s12 = smul.f32 %s150_s11, %s146_s3 }
  0xe5   :  { %s125_s13 = sadd.f32 %s124_s12, %s122_s10 }
  0xe7   :  { %127 = sst [smem:[#allocation11]] %s125_s13 }
  0xe8   :  { %136 = dma.smem_to_hbm %s266_s14, 16, %s134_s9, [#allocation6]  }
  0xe9   :  { %259 = dma.done.wait [#allocation6], 16  }
  0xea   :  { %260 = vsyncadd [#allocation6], 4294967280 }
  0xeb   :  { %141 = sfence }
  0xec   :  { %142 = vsyncpa [#allocation4], 1 }
  0xed   :  { %143 = vsyncpa [#allocation9], 1 }
  0xee   :  { %144 = vsyncpa [#allocation5], 1 }
  0xef   :  { %145 = vsyncpa [#allocation6], 1 }

</bundles_post_ra>
